<compile_context>
chip_gen: v7x
topology: tpu7x:2x2x1
jax: 0.10.0
libtpu: 0.0.40
codegen_flags: <defaults>
</compile_context>

<pallas_src>
import jax
import jax.numpy as jnp
from jax.experimental import pallas as pl
from jax.experimental.pallas import tpu as pltpu

D = 128          # in/out feature size of each Linear
DOUT = 2 * D     # fused output width (mu ++ logvar)


def _sublane_multiple(dtype) -> int:
    """Minimum second-to-last block-dim multiple for packed dtypes."""
    dt = jnp.dtype(dtype)
    if dt.itemsize == 2:   # bf16 / f16
        return 16
    if dt.itemsize == 1:   # int8 / fp8
        return 32
    return 8               # f32 / i32


def _round_up(n: int, m: int) -> int:
    return ((n + m - 1) // m) * m


def _ctx_to_latent_kernel(x_ref, w_ref, b_ref, mu_ref, logvar_ref):
    # x_ref: (tb, 128); w_ref: (128, 256) fused [W_mu^T | W_lv^T];
    # b_ref: (1, 256) fused [b_mu | b_lv]; outputs: (tb, 128) each.
    x = x_ref[...]
    out = jnp.dot(x, w_ref[...], preferred_element_type=jnp.float32)
    out = out + b_ref[...]                      # free VPU filler under MXU
    mu_ref[...] = out[:, :D].astype(mu_ref.dtype)
    logvar_ref[...] = out[:, D:].astype(logvar_ref.dtype)


def prepare_params(w_mu, b_mu, w_lv, b_lv):
    """One-time parameter prep (hoist out of the per-call path).

    w_*: (128, 128) in PyTorch layout (out, in); b_*: (128,).
    Returns fused w_cat (128, 256) = [W_mu^T | W_lv^T] and b_cat (1, 256).
    """
    w_cat = jnp.concatenate([w_mu.T, w_lv.T], axis=1)
    b_cat = jnp.concatenate([b_mu, b_lv], axis=0).reshape(1, DOUT)
    return w_cat, b_cat


def context_to_latent_distribution_fused(x, w_cat, b_cat, *, tb=None):
    """x: (B, 128); w_cat: (128, 256); b_cat: (1, 256). Returns (mu, logvar)."""
    B, Din = x.shape
    assert Din == D, f"expected feature dim {D}, got {Din}"
    assert w_cat.shape == (D, DOUT) and b_cat.shape == (1, DOUT)

    min_rows = _sublane_multiple(x.dtype)
    if tb is None:
        # Big enough to amortize per-step overhead, small enough to pipeline,
        # fit well inside the default scoped VMEM limit on all chips, and give
        # >= 2 grid steps (megacore sharding on v7x) whenever B allows it.
        tb = min(512, _round_up(B, min_rows))
    tb = max(min_rows, _round_up(tb, min_rows))

    # Pad the batch to a multiple of tb (no hard divisibility assert).
    Bp = _round_up(B, tb)
    if Bp != B:
        x = jnp.pad(x, ((0, Bp - B), (0, 0)))

    grid = (Bp // tb,)
    out_shape = (
        jax.ShapeDtypeStruct((Bp, D), x.dtype),
        jax.ShapeDtypeStruct((Bp, D), x.dtype),
    )
    mu, logvar = pl.pallas_call(
        _ctx_to_latent_kernel,
        out_shape=out_shape,
        grid_spec=pltpu.PrefetchScalarGridSpec(
            num_scalar_prefetch=0,
            grid=grid,
            in_specs=[
                pl.BlockSpec((tb, D), lambda i: (i, 0)),     # x tile
                pl.BlockSpec((D, DOUT), lambda i: (0, 0)),   # fused weights (resident)
                pl.BlockSpec((1, DOUT), lambda i: (0, 0)),   # fused bias (resident)
            ],
            out_specs=[
                pl.BlockSpec((tb, D), lambda i: (i, 0)),     # mu tile
                pl.BlockSpec((tb, D), lambda i: (i, 0)),     # logvar tile
            ],
        ),
        compiler_params=pltpu.CompilerParams(
            dimension_semantics=("parallel",)),
    )(x, w_cat, b_cat)

    if Bp != B:
        mu = mu[:B]
        logvar = logvar[:B]
    return mu, logvar


def context_to_latent_distribution(x, w_mu, b_mu, w_lv, b_lv, *, tb=None):
    """Convenience wrapper taking PyTorch-layout weights.

    Prefer calling `prepare_params` once and reusing its result; under jit the
    prep here is constant-folded anyway.
    """
    w_cat, b_cat = prepare_params(w_mu, b_mu, w_lv, b_lv)
    return context_to_latent_distribution_fused(x, w_cat, b_cat, tb=tb)


def _init_linear(key, fan_in, fan_out, dtype=jnp.float32):
    # Deterministic synthetic init mimicking nn.Linear's U(-1/sqrt(fan_in), .)
    kw, kb = jax.random.split(key)
    bound = 1.0 / jnp.sqrt(fan_in)
    w = jax.random.uniform(kw, (fan_out, fan_in), dtype, -bound, bound)
    b = jax.random.uniform(kb, (fan_out,), dtype, -bound, bound)
    return w, b


if __name__ == "__main__":
    key = jax.random.PRNGKey(0)
    kx, kmu, klv, kx2 = jax.random.split(key, 4)

    w_mu, b_mu = _init_linear(kmu, D, D)
    w_lv, b_lv = _init_linear(klv, D, D)
    w_cat, b_cat = prepare_params(w_mu, b_mu, w_lv, b_lv)   # one-time prep

    # Case 1: tiny batch (single grid step).
    B = 8
    x = jax.random.normal(kx, (B, D), jnp.float32)
    mu, logvar = context_to_latent_distribution_fused(x, w_cat, b_cat)
    jax.block_until_ready((mu, logvar))
    mu_ref = x @ w_mu.T + b_mu
    lv_ref = x @ w_lv.T + b_lv
    assert mu.shape == (B, D) and logvar.shape == (B, D)
    assert jnp.allclose(mu, mu_ref, atol=1e-5, rtol=1e-5)
    assert jnp.allclose(logvar, lv_ref, atol=1e-5, rtol=1e-5)

    # Case 2: batch not divisible by the tile (padding path, multi-step grid).
    B2 = 260
    x2 = jax.random.normal(kx2, (B2, D), jnp.float32)
    mu2, logvar2 = context_to_latent_distribution_fused(x2, w_cat, b_cat, tb=128)
    jax.block_until_ready((mu2, logvar2))
    mu2_ref = x2 @ w_mu.T + b_mu
    lv2_ref = x2 @ w_lv.T + b_lv
    assert mu2.shape == (B2, D) and logvar2.shape == (B2, D)
    assert jnp.allclose(mu2, mu2_ref, atol=1e-5, rtol=1e-5)
    assert jnp.allclose(logvar2, lv2_ref, atol=1e-5, rtol=1e-5)

    print("KERNEL_OK")
</pallas_src>

<mosaic_0001>
module attributes {stable_mosaic.version = 11 : i64} {
  func.func @_ctx_to_latent_kernel(%arg0: i32, %arg1: memref<8x128xf32, #tpu.memory_space<vmem>>, %arg2: memref<128x256xf32, #tpu.memory_space<vmem>>, %arg3: memref<1x256xf32, #tpu.memory_space<vmem>>, %arg4: memref<8x128xf32, #tpu.memory_space<vmem>>, %arg5: memref<8x128xf32, #tpu.memory_space<vmem>>) attributes {dimension_semantics = [#tpu.dimension_semantics<parallel>], iteration_bounds = array<i64: 1>, scalar_prefetch = 0 : i64, scratch_operands = 0 : i64, tpu.core_type = #tpu.core_type<tc>, window_params = [{transform_indices = @transform_0, window_bounds = array<i64: 8, 128>}, {pipeline_mode = #tpu.pipeline_mode<synchronous>, transform_indices = @transform_1, window_bounds = array<i64: 128, 256>}, {pipeline_mode = #tpu.pipeline_mode<synchronous>, transform_indices = @transform_2, window_bounds = array<i64: 1, 256>}, {transform_indices = @transform_3, window_bounds = array<i64: 8, 128>}, {transform_indices = @transform_4, window_bounds = array<i64: 8, 128>}]} {
    %c0 = arith.constant 0 : index
    %c0_0 = arith.constant 0 : index
    %0 = vector.load %arg1[%c0, %c0_0] : memref<8x128xf32, #tpu.memory_space<vmem>>, vector<8x128xf32>
    %c0_1 = arith.constant 0 : index
    %c0_2 = arith.constant 0 : index
    %1 = vector.load %arg2[%c0_1, %c0_2] : memref<128x256xf32, #tpu.memory_space<vmem>>, vector<128x256xf32>
    %cst = arith.constant dense<0.000000e+00> : vector<8x256xf32>
    %2 = tpu.matmul %0, %1, %cst {dimension_numbers = #tpu.dot_dimension_numbers<[1], [0], [0], [1], [0, 0, 1, 1], [], []>} : vector<8x128xf32>, vector<128x256xf32>, vector<8x256xf32> -> vector<8x256xf32>
    %c0_3 = arith.constant 0 : index
    %c0_4 = arith.constant 0 : index
    %3 = vector.load %arg3[%c0_3, %c0_4] : memref<1x256xf32, #tpu.memory_space<vmem>>, vector<1x256xf32>
    %4 = vector.broadcast %3 : vector<1x256xf32> to vector<8x256xf32>
    %5 = arith.addf %2, %4 : vector<8x256xf32>
    %6 = vector.extract_strided_slice %5 {offsets = [0, 0], sizes = [8, 128], strides = [1, 1]} : vector<8x256xf32> to vector<8x128xf32>
    %c0_5 = arith.constant 0 : index
    %c0_6 = arith.constant 0 : index
    %7 = vector.load %arg4[%c0_5, %c0_6] : memref<8x128xf32, #tpu.memory_space<vmem>>, vector<8x128xf32>
    tpu.vector_store %arg4[%c0_5, %c0_6], %6 {strides = array<i32>} : memref<8x128xf32, #tpu.memory_space<vmem>>, vector<8x128xf32>,
    %8 = vector.extract_strided_slice %5 {offsets = [0, 128], sizes = [8, 128], strides = [1, 1]} : vector<8x256xf32> to vector<8x128xf32>
    %c0_7 = arith.constant 0 : index
    %c0_8 = arith.constant 0 : index
    %9 = vector.load %arg5[%c0_7, %c0_8] : memref<8x128xf32, #tpu.memory_space<vmem>>, vector<8x128xf32>
    tpu.vector_store %arg5[%c0_7, %c0_8], %8 {strides = array<i32>} : memref<8x128xf32, #tpu.memory_space<vmem>>, vector<8x128xf32>,
    return
  }
  func.func @transform_0(%arg0: i32) -> (i32, i32) {
    %c0_i32 = arith.constant 0 : i32
    %c0_i32_0 = arith.constant 0 : i32
    return %arg0, %c0_i32 : i32, i32
  }
  func.func @transform_1(%arg0: i32) -> (i32, i32) {
    %c0_i32 = arith.constant 0 : i32
    %c0_i32_0 = arith.constant 0 : i32
    %c0_i32_1 = arith.constant 0 : i32
    return %c0_i32, %c0_i32_0 : i32, i32
  }
  func.func @transform_2(%arg0: i32) -> (i32, i32) {
    %c0_i32 = arith.constant 0 : i32
    %c0_i32_0 = arith.constant 0 : i32
    %c0_i32_1 = arith.constant 0 : i32
    return %c0_i32, %c0_i32_0 : i32, i32
  }
  func.func @transform_3(%arg0: i32) -> (i32, i32) {
    %c0_i32 = arith.constant 0 : i32
    %c0_i32_0 = arith.constant 0 : i32
    return %arg0, %c0_i32 : i32, i32
  }
  func.func @transform_4(%arg0: i32) -> (i32, i32) {
    %c0_i32 = arith.constant 0 : i32
    %c0_i32_0 = arith.constant 0 : i32
    return %arg0, %c0_i32 : i32, i32
  }
}

</mosaic_0001>

<bundles_post_ra>
// kernel: tpu_custom_call.1
= control target key start
LH: loop header
LB: loop body
LE: loop exit
PB: predicated region body
PF: predicated region fallthrough
CT: control target
= control target key end

     0   :  { %10 = vsyncpa [#allocation3], 0  ;;  %s417_s0 = inlined_call_operand.hbm [shape: f32[8,128], index: 0, kind: input, shape index: {}]   ;;  %s418_s1 = inlined_call_operand.hbm [shape: f32[128,256], index: 1, kind: input, shape index: {}]   ;;  %s419_s2 = inlined_call_operand.vmem [shape: f32[1,256], index: 2, kind: input, shape index: {}]   ;;  %s420_s3 = inlined_call_operand.hbm [shape: f32[8,128], index: 3, kind: output, shape index: {0}]   ;;  %s421_s4 = inlined_call_operand.hbm [shape: f32[8,128], index: 4, kind: output, shape index: {1}]  }
   0x1   :  { %11 = vsyncpa [#allocation6], 0 }
   0x2   :  { %12 = vsyncpa [#allocation4], 0 }
   0x3   :  { %13 = vsyncpa [#allocation9], 0  ;;  %s327_s15 = smov [#allocation2]   ;;  %s328_s17 = smov [#allocation5]  }
   0x4   :  { %s20_s16 = sshll.u32 %s327_s15, 4  ;;  %s29_s18 = sshll.u32 %s328_s17, 4  ;;  %s21_s16 = int_to_ptr.vmem [resolvable:$true] %s20_s16  ;;  %s359_s18 = int_to_ptr.vmem [resolvable:$true] %s29_s18 }
   0x5   :  { %s231_s21 = scalar_lea.hbm %s417_s0, 128 }
   0x6   :  { %p232_p0 = scmp.ne.s32.totalorder %s417_s0, %s231_s21  ;;  %p235_p1 = scmp.lt.u32.totalorder %s231_s21, %s417_s0 }
   0x8   :  { %p237_p2 = pnand %p235_p1, %p232_p0 }
   0xa   :  { %240 = shalt.err (!%p237_p2)
}
   0xb   :  { %s241_s26 = scalar_lea.vmem %s21_s16, 128  ;;  %p246_p4 = scmp.lt.s32.totalorder %s21_s16, %s21_s16 }
   0xc   :  { %p242_p3 = scmp.ne.s32.totalorder %s21_s16, %s241_s26  ;;  %p247_p5 = scmp.lt.s32.totalorder %s241_s26, %s241_s26 }
   0xe   :  { %p248_p6 = por %p247_p5, %p246_p4 }
  0x10   :  { %p249_p7 = pnand %p248_p6, %p242_p3 }
  0x12   :  { %252 = shalt.err (!%p249_p7)
}
  0x13   :  { %23 = dma.hbm_to_vmem [thread:$0]  %s417_s0, 128, %s21_s16, [#allocation3]  }
  0x14   :  { %s253_s5 = scalar_lea.hbm %s418_s1, 4096 }
  0x15   :  { %p254_p8 = scmp.ne.s32.totalorder %s418_s1, %s253_s5  ;;  %p257_p9 = scmp.lt.u32.totalorder %s253_s5, %s418_s1 }
  0x17   :  { %p259_p10 = pnand %p257_p9, %p254_p8 }
  0x19   :  { %262 = shalt.err (!%p259_p10)
}
  0x1a   :  { %s263_s10 = scalar_lea.vmem %s359_s18, 4096  ;;  %p268_p12 = scmp.lt.s32.totalorder %s359_s18, %s359_s18 }
  0x1b   :  { %p264_p11 = scmp.ne.s32.totalorder %s359_s18, %s263_s10  ;;  %p269_p13 = scmp.lt.s32.totalorder %s263_s10, %s263_s10 }
  0x1d   :  { %p270_p0 = por %p269_p13, %p268_p12 }
  0x1f   :  { %p271_p1 = pnand %p270_p0, %p264_p11 }
  0x21   :  { %274 = shalt.err (!%p271_p1)
}
  0x22   :  { %s329_s0 = smov 256   ;;  %s330_s11 = smov 16  }
  0x23   :  { %35 = dma.hbm_to_vmem [thread:$0]  %s418_s1, 4096, %s359_s18, [#allocation6], %s329_s0, %s329_s0, %s330_s11  }
  0x24   :  { %319 = dma.done.wait [#allocation3], 128  }
  0x25   :  { %320 = vsyncadd [#allocation3], 4294967168 }
  0x26   :  { %321 = dma.done.wait [#allocation6], 4096  }
  0x27   :  { %322 = vsyncadd [#allocation6], 4294963200  ;;  %v331_v0 = vmov 0.0   ;;  %v46_v1 = vld [vmem:[#allocation5 + $0x8] sm:$0xff]  ;;  %v48_v2 = vld [vmem:[#allocation5 + $0x18] sm:$0xff]  ;;  %v79_v50 = vlaneseq  ;;  %s332_s15 = smov [#allocation7]  }
  0x28   :  { %153 = vmatprep.mubr.f32.mxu0 %v331_v0  ;;  %v45_v3 = vld [vmem:[#allocation5] sm:$0xff]  ;;  %v192_v4 = vpack.c.bf16 %v48_v2, %v46_v1  ;;  %v47_v5 = vld [vmem:[#allocation5 + $0x10] sm:$0xff]  ;;  %v50_v6 = vld [vmem:[#allocation5 + $0x28] sm:$0xff]  ;;  %s168_s16 = sshll.u32 %s332_s15, 4  ;;  %s333_s17 = smov [#allocation8]   ;;  %s169_s16 = int_to_ptr.vmem [resolvable:$true] %s168_s16 }
  0x29   :  { %v52_v7 = vld [vmem:[#allocation5 + $0x38] sm:$0xff]  ;;  %v194_v8 = vpack.c.bf16 %v47_v5, %v45_v3  ;;  %v49_v10 = vld [vmem:[#allocation5 + $0x20] sm:$0xff]  ;;  %v51_v11 = vld [vmem:[#allocation5 + $0x30] sm:$0xff]  ;;  %v80_v51 = vshrl.u32 %v79_v50, 7  ;;  %s178_s18 = sshll.u32 %s333_s17, 4  ;;  %s275_s19 = scalar_lea.vmem %s169_s16, 128  ;;  %s179_s18 = int_to_ptr.vmem [resolvable:$true] %s178_s18 }
  0x2a   :  { %v196_v9 = vpack.c.bf16 %v52_v7, %v50_v6  ;;  %v54_v12 = vld [vmem:[#allocation5 + $0x48] sm:$0xff]  ;;  %193 = vmatprep.subr.bf16.mxu0 %v192_v4  ;;  %v56_v13 = vld [vmem:[#allocation5 + $0x58] sm:$0xff]  ;;  %v198_v14 = vpack.c.bf16 %v51_v11, %v49_v10  ;;  %v53_v16 = vld [vmem:[#allocation5 + $0x40] sm:$0xff]  ;;  %p276_p2 = scmp.ne.s32.totalorder %s169_s16, %s275_s19  ;;  %p280_p3 = scmp.lt.s32.totalorder %s169_s16, %s169_s16 }
  0x2b   :  { %195 = vmatpush1.bf16.msra.mxu0 %v194_v8  ;;  %v200_v15 = vpack.c.bf16 %v56_v13, %v54_v12  ;;  %v55_v17 = vld [vmem:[#allocation5 + $0x50] sm:$0xff]  ;;  %v58_v18 = vld [vmem:[#allocation5 + $0x68] sm:$0xff]  ;;  %v60_v19 = vld [vmem:[#allocation5 + $0x78] sm:$0xff]  ;;  %v81_v52 = vsub.s32 0, %v80_v51  ;;  %v85_v54 = vsub.s32 1, %v80_v51  ;;  %p281_p4 = scmp.lt.s32.totalorder %s275_s19, %s275_s19 }
  0x2c   :  { %197 = vmatprep.subr.bf16.mxu0 %v196_v9  ;;  %v202_v20 = vpack.c.bf16 %v55_v17, %v53_v16  ;;  %v204_v21 = vpack.c.bf16 %v60_v19, %v58_v18  ;;  %v57_v22 = vld [vmem:[#allocation5 + $0x60] sm:$0xff]  ;;  %v59_v23 = vld [vmem:[#allocation5 + $0x70] sm:$0xff]  ;;  %v62_v24 = vld [vmem:[#allocation5 + $0x88] sm:$0xff] }
  0x2d   :  { %v64_v25 = vld [vmem:[#allocation5 + $0x98] sm:$0xff]  ;;  %v206_v26 = vpack.c.bf16 %v59_v23, %v57_v22  ;;  %v61_v28 = vld [vmem:[#allocation5 + $0x80] sm:$0xff]  ;;  %v63_v29 = vld [vmem:[#allocation5 + $0x90] sm:$0xff]  ;;  %p282_p5 = por %p281_p4, %p280_p3 }
  0x2e   :  { %v208_v27 = vpack.c.bf16 %v64_v25, %v62_v24  ;;  %v66_v30 = vld [vmem:[#allocation5 + $0xa8] sm:$0xff]  ;;  %v68_v31 = vld [vmem:[#allocation5 + $0xb8] sm:$0xff]  ;;  %v210_v32 = vpack.c.bf16 %v63_v29, %v61_v28  ;;  %v65_v34 = vld [vmem:[#allocation5 + $0xa0] sm:$0xff] }
  0x2f   :  { %199 = vmatpush1.bf16.msra.mxu0 %v198_v14  ;;  %v212_v33 = vpack.c.bf16 %v68_v31, %v66_v30  ;;  %v67_v35 = vld [vmem:[#allocation5 + $0xb0] sm:$0xff]  ;;  %v70_v36 = vld [vmem:[#allocation5 + $0xc8] sm:$0xff]  ;;  %v72_v37 = vld [vmem:[#allocation5 + $0xd8] sm:$0xff]  ;;  %p283_p6 = pnand %p282_p5, %p276_p2 }
  0x30   :  { %201 = vmatprep.subr.bf16.mxu0 %v200_v15  ;;  %v214_v38 = vpack.c.bf16 %v67_v35, %v65_v34  ;;  %v216_v39 = vpack.c.bf16 %v72_v37, %v70_v36  ;;  %v69_v40 = vld [vmem:[#allocation5 + $0xc0] sm:$0xff]  ;;  %v71_v41 = vld [vmem:[#allocation5 + $0xd0] sm:$0xff]  ;;  %v74_v42 = vld [vmem:[#allocation5 + $0xe8] sm:$0xff] }
  0x31   :  { %v76_v43 = vld [vmem:[#allocation5 + $0xf8] sm:$0xff]  ;;  %v218_v44 = vpack.c.bf16 %v71_v41, %v69_v40  ;;  %v73_v46 = vld [vmem:[#allocation5 + $0xe0] sm:$0xff]  ;;  %v75_v47 = vld [vmem:[#allocation5 + $0xf0] sm:$0xff] }
  0x32   :  { %v220_v45 = vpack.c.bf16 %v76_v43, %v74_v42  ;;  %v222_v48 = vpack.c.bf16 %v75_v47, %v73_v46  ;;  %v44_v49 = vld [vmem:[#allocation2] sm:$0xff] }
  0x33   :  { %203 = vmatpush1.bf16.msra.mxu0 %v202_v20  ;;  %v77_v53 = vld [vmem:[%s419_s2] sm:$0x3] }
  0x34   :  { %205 = vmatprep.subr.bf16.mxu0 %v204_v21  ;;  %v82_v55 = vrot.slane %v77_v53, %v81_v52  ;;  %v86_v56 = vrot.slane %v77_v53, %v85_v54 }
  0x37   :  { %207 = vmatpush1.bf16.msra.mxu0 %v206_v26 }
  0x38   :  { %209 = vmatprep.subr.bf16.mxu0 %v208_v27 }
  0x3b   :  { %211 = vmatpush1.bf16.msra.mxu0 %v210_v32 }
  0x3c   :  { %213 = vmatprep.subr.bf16.mxu0 %v212_v33 }
  0x3f   :  { %215 = vmatpush1.bf16.msra.mxu0 %v214_v38 }
  0x40   :  { %217 = vmatprep.subr.bf16.mxu0 %v216_v39 }
  0x43   :  { %219 = vmatpush1.bf16.msra.mxu0 %v218_v44 }
  0x44   :  { %221 = vmatprep.subr.bf16.mxu0 %v220_v45 }
  0x47   :  { %223 = vmatpush1.bf16.msra.mxu0 %v222_v48 }
  0x4a   :  { %154 = vmatmul.mubr.f32.vlgmr.msra.gmra.mrb[0].mxu0 %v44_v49 }
 0x11d   :  { %v155_v57 = vpop.f32.mrb[0].mxu0 }
 0x11e   :  { %v156_v58 = vadd.f32 %v155_v57, %v82_v55  ;;  %v157_v59 = vpop.f32.mrb[1].mxu0 }
 0x11f   :  { %v158_v60 = vadd.f32 %v157_v59, %v86_v56 }
 0x120   :  { %160 = vst [vmem:[#allocation7] sm:$0xff] %v156_v58 }
 0x121   :  { %161 = vst [vmem:[#allocation8] sm:$0xff] %v158_v60 }
 0x122   :  { %286 = shalt.err (!%p283_p6)
}
 0x123   :  { %s287_s21 = scalar_lea.hbm %s420_s3, 128 }
 0x124   :  { %p288_p7 = scmp.ne.s32.totalorder %s420_s3, %s287_s21  ;;  %p291_p8 = scmp.lt.u32.totalorder %s287_s21, %s420_s3 }
 0x126   :  { %p293_p9 = pnand %p291_p8, %p288_p7 }
 0x128   :  { %296 = shalt.err (!%p293_p9)
}
 0x129   :  { %171 = dma.vmem_to_hbm [thread:$0]  %s169_s16, 128, %s420_s3, [#allocation4]  }
 0x12a   :  { %s297_s28 = scalar_lea.vmem %s179_s18, 128  ;;  %p302_p11 = scmp.lt.s32.totalorder %s179_s18, %s179_s18 }
 0x12b   :  { %p298_p10 = scmp.ne.s32.totalorder %s179_s18, %s297_s28  ;;  %p303_p12 = scmp.lt.s32.totalorder %s297_s28, %s297_s28 }
 0x12d   :  { %p304_p13 = por %p303_p12, %p302_p11 }
 0x12f   :  { %p305_p0 = pnand %p304_p13, %p298_p10 }
 0x131   :  { %308 = shalt.err (!%p305_p0)
}
 0x132   :  { %s309_s5 = scalar_lea.hbm %s421_s4, 128 }
 0x133   :  { %p310_p1 = scmp.ne.s32.totalorder %s421_s4, %s309_s5  ;;  %p313_p2 = scmp.lt.u32.totalorder %s309_s5, %s421_s4 }
 0x135   :  { %p315_p3 = pnand %p313_p2, %p310_p1 }
 0x137   :  { %318 = shalt.err (!%p315_p3)
}
 0x138   :  { %181 = dma.vmem_to_hbm [thread:$0]  %s179_s18, 128, %s421_s4, [#allocation9]  }
 0x139   :  { %323 = dma.done.wait [#allocation4], 128  }
 0x13a   :  { %324 = vsyncadd [#allocation4], 4294967168 }
 0x13b   :  { %325 = dma.done.wait [#allocation9], 128  }
 0x13c   :  { %326 = vsyncadd [#allocation9], 4294967168 }
 0x13d   :  { %188 = vsyncpa [#allocation3], 1 }
 0x13e   :  { %189 = vsyncpa [#allocation6], 1 }
 0x13f   :  { %190 = vsyncpa [#allocation4], 1 }
 0x140   :  { %191 = vsyncpa [#allocation9], 1 }

</bundles_post_ra>
